<compile_context>
chip_gen: v7x
topology: tpu7x:2x2x1
jax: 0.10.0
libtpu: 0.0.40
codegen_flags: <defaults>
</compile_context>

<pallas_src>
import functools

import jax
import jax.numpy as jnp
from jax.experimental import pallas as pl
from jax.experimental.pallas import tpu as pltpu


def _round_up(x, m):
    return (x + m - 1) // m * m


def global_block_kernel(edges_ref, nodes_ref, globals_ref, we_ref, wn_ref,
                        wg_ref, b_ref, out_ref, e_acc, n_acc, *,
                        n_edge, n_node, tne, tnn, n_steps):
    n = pl.program_id(1)

    @pl.when(n == 0)
    def _init():
        e_acc[...] = jnp.zeros_like(e_acc)
        n_acc[...] = jnp.zeros_like(n_acc)

    e_blocks = pl.cdiv(n_edge, tne)
    n_blocks = pl.cdiv(n_node, tnn)

    def accumulate(src_ref, acc_ref, total_rows, tile_rows, blocks):
        # Streamed per-tile reduction: VPU accumulate into f32 VMEM scratch.
        def _do():
            x = src_ref[...]                               # [tb, rows, D]
            if (total_rows % tile_rows != 0) or (blocks < n_steps):
                # Mask the ragged tail (and fully-stale clamped blocks).
                rem = total_rows - n * tile_rows           # runtime scalar
                row = jax.lax.broadcasted_iota(jnp.int32, x.shape, 1)
                x = jnp.where(row < rem, x, 0.0)
            acc_ref[...] += jnp.sum(x, axis=1)             # [tb, D]
        if blocks < n_steps:
            # This input finishes before the other one: skip idle steps.
            pl.when(n * tile_rows < total_rows)(_do)
        else:
            _do()

    accumulate(edges_ref, e_acc, n_edge, tne, e_blocks)
    accumulate(nodes_ref, n_acc, n_node, tnn, n_blocks)

    @pl.when(n == pl.num_programs(1) - 1)
    def _finalize():
        # Linear(concat([e_agg, n_agg, g])) as three dots against pre-split
        # resident weights (exactly equivalent to concat @ W).
        out = jnp.dot(e_acc[...], we_ref[...], preferred_element_type=jnp.float32)
        out += jnp.dot(n_acc[...], wn_ref[...], preferred_element_type=jnp.float32)
        out += jnp.dot(globals_ref[...], wg_ref[...],
                       preferred_element_type=jnp.float32)
        out += b_ref[...]                                  # [1, D_out_p] broadcast
        out_ref[...] = out.astype(out_ref.dtype)


def global_block(edges, nodes, globals_, w, b, *, target_block_bytes=2 << 20):
    """GlobalBlock forward; returns updated globals [B, D_out].

    w: [D_edge + D_node + D_glob, D_out], b: [D_out]
    """
    B, n_edge, d_edge = edges.shape
    _, n_node, d_node = nodes.shape
    _, d_glob = globals_.shape
    k_total, d_out = w.shape
    assert k_total == d_edge + d_node + d_glob

    # ---- Lane-dense output: pad D_out to a multiple of 128 (tiny arrays). ----
    d_out_p = _round_up(d_out, 128)
    if d_out_p != d_out:
        w = jnp.pad(w, ((0, 0), (0, d_out_p - d_out)))
        b = jnp.pad(b, (0, d_out_p - d_out))
    w_e = w[:d_edge]
    w_n = w[d_edge:d_edge + d_node]
    w_g = w[d_edge + d_node:]
    b2 = b.reshape(1, d_out_p)

    # ---- Batch tiling (multiple of 8 when possible; ragged tail handled by
    # Pallas OOB write-masking, so no wrapper-side batch padding needed). ----
    tb = 8 if B >= 8 else B
    n_batch_tiles = pl.cdiv(B, tb)

    # ---- Reduction-axis row tiles: largest multiple of 8 whose block is
    # ~target_block_bytes (double-buffered by the pipeline). ----
    def pick_rows(n_rows, feat):
        rows = (target_block_bytes // max(1, tb * feat * 4)) // 8 * 8
        rows = max(8, rows)
        return min(rows, _round_up(n_rows, 8))

    tne = pick_rows(n_edge, d_edge)
    tnn = pick_rows(n_node, d_node)
    e_blocks = pl.cdiv(n_edge, tne)
    n_blocks = pl.cdiv(n_node, tnn)
    n_steps = max(e_blocks, n_blocks)

    grid = (n_batch_tiles, n_steps)

    # Clamp the shorter input's block index so it never runs past its array;
    # the repeated (revisited) block is skipped by the pipeline and masked to
    # zero in the kernel.
    if e_blocks == n_steps:
        e_map = lambda i, n: (i, n, 0)
    else:
        e_map = lambda i, n, _last=e_blocks - 1: (i, jnp.minimum(n, _last), 0)
    if n_blocks == n_steps:
        n_map = lambda i, n: (i, n, 0)
    else:
        n_map = lambda i, n, _last=n_blocks - 1: (i, jnp.minimum(n, _last), 0)

    # Explicit VMEM budget (double-buffered inputs + resident weights/bias +
    # output block + scratch), with headroom; conservative for v7x (64 MiB).
    block_bytes = 4 * (2 * tb * tne * d_edge + 2 * tb * tnn * d_node
                       + 2 * tb * d_glob + 2 * tb * d_out_p
                       + k_total * d_out_p + d_out_p
                       + tb * (d_edge + d_node))
    vmem_limit = int(min(max(2 * block_bytes, 8 << 20), 64 << 20))

    flops = 2 * B * k_total * d_out
    bytes_accessed = 4 * (edges.size + nodes.size + globals_.size
                          + w.size + b.size + B * d_out_p)

    kernel = functools.partial(global_block_kernel, n_edge=n_edge,
                               n_node=n_node, tne=tne, tnn=tnn,
                               n_steps=n_steps)

    out = pl.pallas_call(
        kernel,
        out_shape=jax.ShapeDtypeStruct((B, d_out_p), jnp.float32),
        grid_spec=pltpu.PrefetchScalarGridSpec(
            num_scalar_prefetch=0,
            grid=grid,
            in_specs=[
                pl.BlockSpec((tb, tne, d_edge), e_map),
                pl.BlockSpec((tb, tnn, d_node), n_map),
                pl.BlockSpec((tb, d_glob), lambda i, n: (i, 0)),
                pl.BlockSpec((d_edge, d_out_p), lambda i, n: (0, 0)),  # resident
                pl.BlockSpec((d_node, d_out_p), lambda i, n: (0, 0)),  # resident
                pl.BlockSpec((d_glob, d_out_p), lambda i, n: (0, 0)),  # resident
                pl.BlockSpec((1, d_out_p), lambda i, n: (0, 0)),       # resident
            ],
            out_specs=pl.BlockSpec((tb, d_out_p), lambda i, n: (i, 0)),
            scratch_shapes=[
                pltpu.VMEM((tb, d_edge), jnp.float32),
                pltpu.VMEM((tb, d_node), jnp.float32),
            ],
        ),
        compiler_params=pltpu.CompilerParams(
            dimension_semantics=("parallel", "arbitrary"),
            vmem_limit_bytes=vmem_limit,
        ),
        cost_estimate=pl.CostEstimate(
            flops=int(flops), transcendentals=0,
            bytes_accessed=int(bytes_accessed)),
    )(edges, nodes, globals_, w_e, w_n, w_g, b2)

    return out[:, :d_out]


def global_block_ref(edges, nodes, globals_, w, b):
    e_agg = jnp.sum(edges, axis=1)
    n_agg = jnp.sum(nodes, axis=1)
    collected = jnp.concatenate([e_agg, n_agg, globals_], axis=1)
    return collected @ w + b


if __name__ == "__main__":
    # Small deterministic shapes chosen so edges need several reduction steps,
    # nodes finish early (idle/clamped steps) and have a ragged tail (mask path).
    B, N_EDGE, N_NODE = 2, 24, 10
    D_EDGE, D_NODE, D_GLOB, D_OUT = 32, 32, 32, 32

    key = jax.random.PRNGKey(0)
    k_e, k_n, k_g, k_w, k_b = jax.random.split(key, 5)

    edges = jax.random.normal(k_e, (B, N_EDGE, D_EDGE), dtype=jnp.float32)
    nodes = jax.random.normal(k_n, (B, N_NODE, D_NODE), dtype=jnp.float32)
    globals_ = jax.random.normal(k_g, (B, D_GLOB), dtype=jnp.float32)

    # Deterministic synthetic parameters for the global (Linear) model.
    w = jax.random.normal(k_w, (D_EDGE + D_NODE + D_GLOB, D_OUT),
                          dtype=jnp.float32) * 0.05
    b = jax.random.normal(k_b, (D_OUT,), dtype=jnp.float32) * 0.05

    # Tiny target block size so the toy shapes still run a multi-step grid.
    out = global_block(edges, nodes, globals_, w, b, target_block_bytes=2048)
    out = jax.block_until_ready(out)

    ref = global_block_ref(edges, nodes, globals_, w, b)
    assert out.shape == (B, D_OUT)
    assert jnp.allclose(out, ref, atol=1e-4, rtol=1e-4)

    # TODO(synk): graph.replace(globals=...) is dataclass plumbing; the kernel
    # returns only the updated globals tensor.
    print("KERNEL_OK")
</pallas_src>

<mosaic_0001>
module attributes {stable_mosaic.version = 11 : i64} {
  func.func @global_block_kernel(%arg0: i32, %arg1: i32, %arg2: memref<2x8x32xf32, #tpu.memory_space<vmem>>, %arg3: memref<2x8x32xf32, #tpu.memory_space<vmem>>, %arg4: memref<2x32xf32, #tpu.memory_space<vmem>>, %arg5: memref<32x128xf32, #tpu.memory_space<vmem>>, %arg6: memref<32x128xf32, #tpu.memory_space<vmem>>, %arg7: memref<32x128xf32, #tpu.memory_space<vmem>>, %arg8: memref<1x128xf32, #tpu.memory_space<vmem>>, %arg9: memref<2x128xf32, #tpu.memory_space<vmem>>, %arg10: memref<2x32xf32, #tpu.memory_space<vmem>>, %arg11: memref<2x32xf32, #tpu.memory_space<vmem>>) attributes {dimension_semantics = [#tpu.dimension_semantics<parallel>, #tpu.dimension_semantics<arbitrary>], iteration_bounds = array<i64: 1, 3>, scalar_prefetch = 0 : i64, scratch_operands = 2 : i64, tpu.core_type = #tpu.core_type<tc>, window_params = [{transform_indices = @transform_0, window_bounds = array<i64: 2, 8, 32>}, {transform_indices = @transform_1, window_bounds = array<i64: 2, 8, 32>}, {transform_indices = @transform_2, window_bounds = array<i64: 2, 32>}, {pipeline_mode = #tpu.pipeline_mode<synchronous>, transform_indices = @transform_3, window_bounds = array<i64: 32, 128>}, {pipeline_mode = #tpu.pipeline_mode<synchronous>, transform_indices = @transform_4, window_bounds = array<i64: 32, 128>}, {pipeline_mode = #tpu.pipeline_mode<synchronous>, transform_indices = @transform_5, window_bounds = array<i64: 32, 128>}, {pipeline_mode = #tpu.pipeline_mode<synchronous>, transform_indices = @transform_6, window_bounds = array<i64: 1, 128>}, {transform_indices = @transform_7, window_bounds = array<i64: 2, 128>}]} {
    %c0_i32 = arith.constant 0 : i32
    %0 = arith.cmpi eq, %arg1, %c0_i32 : i32
    %1 = arith.extui %0 : i1 to i32
    %c0_i32_0 = arith.constant 0 : i32
    %2 = arith.cmpi ne, %1, %c0_i32_0 : i32
    scf.if %2 {
      %cst_9 = arith.constant 0.000000e+00 : f32
      %15 = vector.broadcast %cst_9 : f32 to vector<2x32xf32>
      %c0_10 = arith.constant 0 : index
      %c0_11 = arith.constant 0 : index
      %16 = vector.load %arg10[%c0_10, %c0_11] : memref<2x32xf32, #tpu.memory_space<vmem>>, vector<2x32xf32>
      tpu.vector_store %arg10[%c0_10, %c0_11], %15 {strides = array<i32>} : memref<2x32xf32, #tpu.memory_space<vmem>>, vector<2x32xf32>,
      %cst_12 = arith.constant 0.000000e+00 : f32
      %17 = vector.broadcast %cst_12 : f32 to vector<2x32xf32>
      %c0_13 = arith.constant 0 : index
      %c0_14 = arith.constant 0 : index
      %18 = vector.load %arg11[%c0_13, %c0_14] : memref<2x32xf32, #tpu.memory_space<vmem>>, vector<2x32xf32>
      tpu.vector_store %arg11[%c0_13, %c0_14], %17 {strides = array<i32>} : memref<2x32xf32, #tpu.memory_space<vmem>>, vector<2x32xf32>,
    } else {
    }
    %c0 = arith.constant 0 : index
    %c0_1 = arith.constant 0 : index
    %c0_2 = arith.constant 0 : index
    %3 = vector.load %arg2[%c0, %c0_1, %c0_2] : memref<2x8x32xf32, #tpu.memory_space<vmem>>, vector<2x8x32xf32>
    %c0_3 = arith.constant 0 : index
    %c0_4 = arith.constant 0 : index
    %4 = vector.load %arg10[%c0_3, %c0_4] : memref<2x32xf32, #tpu.memory_space<vmem>>, vector<2x32xf32>
    %cst = arith.constant dense<0.000000e+00> : vector<2x32xf32>
    %5 = vector.multi_reduction <add>, %3, %cst [1] : vector<2x8x32xf32> to vector<2x32xf32>
    %6 = arith.addf %4, %5 : vector<2x32xf32>
    %c0_5 = arith.constant 0 : index
    %c0_6 = arith.constant 0 : index
    %7 = vector.load %arg10[%c0_5, %c0_6] : memref<2x32xf32, #tpu.memory_space<vmem>>, vector<2x32xf32>
    tpu.vector_store %arg10[%c0_5, %c0_6], %6 {strides = array<i32>} : memref<2x32xf32, #tpu.memory_space<vmem>>, vector<2x32xf32>,
    %c8_i32 = arith.constant 8 : i32
    %8 = arith.muli %arg1, %c8_i32 : i32
    %c10_i32 = arith.constant 10 : i32
    %9 = arith.cmpi slt, %8, %c10_i32 : i32
    %10 = arith.extui %9 : i1 to i32
    %c0_i32_7 = arith.constant 0 : i32
    %11 = arith.cmpi ne, %10, %c0_i32_7 : i32
    scf.if %11 {
      %c0_9 = arith.constant 0 : index
      %c0_10 = arith.constant 0 : index
      %c0_11 = arith.constant 0 : index
      %15 = vector.load %arg3[%c0_9, %c0_10, %c0_11] : memref<2x8x32xf32, #tpu.memory_space<vmem>>, vector<2x8x32xf32>
      %c8_i32_12 = arith.constant 8 : i32
      %16 = arith.muli %arg1, %c8_i32_12 : i32
      %c10_i32_13 = arith.constant 10 : i32
      %17 = arith.subi %c10_i32_13, %16 : i32
      %18 = tpu.iota {dimensions = array<i32: 1>} : vector<2x8x32xi32>
      %19 = vector.broadcast %17 : i32 to vector<2x8x32xi32>
      %20 = arith.cmpi slt, %18, %19 : vector<2x8x32xi32>
      %cst_14 = arith.constant 0.000000e+00 : f32
      %21 = vector.broadcast %cst_14 : f32 to vector<2x8x32xf32>
      %22 = arith.select %20, %15, %21 : vector<2x8x32xi1>, vector<2x8x32xf32>
      %c0_15 = arith.constant 0 : index
      %c0_16 = arith.constant 0 : index
      %23 = vector.load %arg11[%c0_15, %c0_16] : memref<2x32xf32, #tpu.memory_space<vmem>>, vector<2x32xf32>
      %cst_17 = arith.constant dense<0.000000e+00> : vector<2x32xf32>
      %24 = vector.multi_reduction <add>, %22, %cst_17 [1] : vector<2x8x32xf32> to vector<2x32xf32>
      %25 = arith.addf %23, %24 : vector<2x32xf32>
      %c0_18 = arith.constant 0 : index
      %c0_19 = arith.constant 0 : index
      %26 = vector.load %arg11[%c0_18, %c0_19] : memref<2x32xf32, #tpu.memory_space<vmem>>, vector<2x32xf32>
      tpu.vector_store %arg11[%c0_18, %c0_19], %25 {strides = array<i32>} : memref<2x32xf32, #tpu.memory_space<vmem>>, vector<2x32xf32>,
    } else {
    }
    %c2_i32 = arith.constant 2 : i32
    %12 = arith.cmpi eq, %arg1, %c2_i32 : i32
    %13 = arith.extui %12 : i1 to i32
    %c0_i32_8 = arith.constant 0 : i32
    %14 = arith.cmpi ne, %13, %c0_i32_8 : i32
    scf.if %14 {
      %c0_9 = arith.constant 0 : index
      %c0_10 = arith.constant 0 : index
      %15 = vector.load %arg10[%c0_9, %c0_10] : memref<2x32xf32, #tpu.memory_space<vmem>>, vector<2x32xf32>
      %c0_11 = arith.constant 0 : index
      %c0_12 = arith.constant 0 : index
      %16 = vector.load %arg5[%c0_11, %c0_12] : memref<32x128xf32, #tpu.memory_space<vmem>>, vector<32x128xf32>
      %cst_13 = arith.constant dense<0.000000e+00> : vector<2x128xf32>
      %17 = tpu.matmul %15, %16, %cst_13 {dimension_numbers = #tpu.dot_dimension_numbers<[1], [0], [0], [1], [0, 0, 1, 1], [], []>} : vector<2x32xf32>, vector<32x128xf32>, vector<2x128xf32> -> vector<2x128xf32>
      %c0_14 = arith.constant 0 : index
      %c0_15 = arith.constant 0 : index
      %18 = vector.load %arg11[%c0_14, %c0_15] : memref<2x32xf32, #tpu.memory_space<vmem>>, vector<2x32xf32>
      %c0_16 = arith.constant 0 : index
      %c0_17 = arith.constant 0 : index
      %19 = vector.load %arg6[%c0_16, %c0_17] : memref<32x128xf32, #tpu.memory_space<vmem>>, vector<32x128xf32>
      %cst_18 = arith.constant dense<0.000000e+00> : vector<2x128xf32>
      %20 = tpu.matmul %18, %19, %cst_18 {dimension_numbers = #tpu.dot_dimension_numbers<[1], [0], [0], [1], [0, 0, 1, 1], [], []>} : vector<2x32xf32>, vector<32x128xf32>, vector<2x128xf32> -> vector<2x128xf32>
      %21 = arith.addf %17, %20 : vector<2x128xf32>
      %c0_19 = arith.constant 0 : index
      %c0_20 = arith.constant 0 : index
      %22 = vector.load %arg4[%c0_19, %c0_20] : memref<2x32xf32, #tpu.memory_space<vmem>>, vector<2x32xf32>
      %c0_21 = arith.constant 0 : index
      %c0_22 = arith.constant 0 : index
      %23 = vector.load %arg7[%c0_21, %c0_22] : memref<32x128xf32, #tpu.memory_space<vmem>>, vector<32x128xf32>
      %cst_23 = arith.constant dense<0.000000e+00> : vector<2x128xf32>
      %24 = tpu.matmul %22, %23, %cst_23 {dimension_numbers = #tpu.dot_dimension_numbers<[1], [0], [0], [1], [0, 0, 1, 1], [], []>} : vector<2x32xf32>, vector<32x128xf32>, vector<2x128xf32> -> vector<2x128xf32>
      %25 = arith.addf %21, %24 : vector<2x128xf32>
      %c0_24 = arith.constant 0 : index
      %c0_25 = arith.constant 0 : index
      %26 = vector.load %arg8[%c0_24, %c0_25] : memref<1x128xf32, #tpu.memory_space<vmem>>, vector<1x128xf32>
      %27 = vector.broadcast %26 : vector<1x128xf32> to vector<2x128xf32>
      %28 = arith.addf %25, %27 : vector<2x128xf32>
      %c0_26 = arith.constant 0 : index
      %c0_27 = arith.constant 0 : index
      %29 = vector.load %arg9[%c0_26, %c0_27] : memref<2x128xf32, #tpu.memory_space<vmem>>, vector<2x128xf32>
      tpu.vector_store %arg9[%c0_26, %c0_27], %28 {strides = array<i32>} : memref<2x128xf32, #tpu.memory_space<vmem>>, vector<2x128xf32>,
    } else {
    }
    return
  }
  func.func @transform_0(%arg0: i32, %arg1: i32) -> (i32, i32, i32) {
    %c0_i32 = arith.constant 0 : i32
    %c0_i32_0 = arith.constant 0 : i32
    return %arg0, %arg1, %c0_i32 : i32, i32, i32
  }
  func.func @transform_1(%arg0: i32, %arg1: i32) -> (i32, i32, i32) {
    %c1_i32 = arith.constant 1 : i32
    %0 = arith.minsi %arg1, %c1_i32 : i32
    %c0_i32 = arith.constant 0 : i32
    %c0_i32_0 = arith.constant 0 : i32
    return %arg0, %0, %c0_i32 : i32, i32, i32
  }
  func.func @transform_2(%arg0: i32, %arg1: i32) -> (i32, i32) {
    %c0_i32 = arith.constant 0 : i32
    %c0_i32_0 = arith.constant 0 : i32
    return %arg0, %c0_i32 : i32, i32
  }
  func.func @transform_3(%arg0: i32, %arg1: i32) -> (i32, i32) {
    %c0_i32 = arith.constant 0 : i32
    %c0_i32_0 = arith.constant 0 : i32
    %c0_i32_1 = arith.constant 0 : i32
    return %c0_i32, %c0_i32_0 : i32, i32
  }
  func.func @transform_4(%arg0: i32, %arg1: i32) -> (i32, i32) {
    %c0_i32 = arith.constant 0 : i32
    %c0_i32_0 = arith.constant 0 : i32
    %c0_i32_1 = arith.constant 0 : i32
    return %c0_i32, %c0_i32_0 : i32, i32
  }
  func.func @transform_5(%arg0: i32, %arg1: i32) -> (i32, i32) {
    %c0_i32 = arith.constant 0 : i32
    %c0_i32_0 = arith.constant 0 : i32
    %c0_i32_1 = arith.constant 0 : i32
    return %c0_i32, %c0_i32_0 : i32, i32
  }
  func.func @transform_6(%arg0: i32, %arg1: i32) -> (i32, i32) {
    %c0_i32 = arith.constant 0 : i32
    %c0_i32_0 = arith.constant 0 : i32
    %c0_i32_1 = arith.constant 0 : i32
    return %c0_i32, %c0_i32_0 : i32, i32
  }
  func.func @transform_7(%arg0: i32, %arg1: i32) -> (i32, i32) {
    %c0_i32 = arith.constant 0 : i32
    %c0_i32_0 = arith.constant 0 : i32
    return %arg0, %c0_i32 : i32, i32
  }
}

</mosaic_0001>

<bundles_post_ra>
// kernel: tpu_custom_call.1
= control target key start
LH: loop header
LB: loop body
LE: loop exit
PB: predicated region body
PF: predicated region fallthrough
CT: control target
= control target key end

     0   :  { %s1599_s0 = inlined_call_operand.vmem [shape: f32[2,24,32], index: 0, kind: input, shape index: {}]   ;;  %s1600_s1 = inlined_call_operand.vmem [shape: f32[2,10,32], index: 1, kind: input, shape index: {}]   ;;  %s1601_s2 = inlined_call_operand.vmem [shape: f32[2,32], index: 2, kind: input, shape index: {}]   ;;  %s1602_s3 = inlined_call_operand.hbm [shape: f32[32,128], index: 3, kind: input, shape index: {}]   ;;  %s1603_s4 = inlined_call_operand.hbm [shape: f32[32,128], index: 4, kind: input, shape index: {}]   ;;  %s1604_s5 = inlined_call_operand.hbm [shape: f32[32,128], index: 5, kind: input, shape index: {}]   ;;  %s1605_s6 = inlined_call_operand.vmem [shape: f32[1,128], index: 6, kind: input, shape index: {}]   ;;  %s1606_s7 = inlined_call_operand.hbm [shape: f32[2,128], index: 7, kind: output, shape index: {}]  }
   0x1   :  { %1617 = sst [smem:[#allocation23_spill]] %s1601_s2 }
   0x2   :  { %1618 = sst [smem:[#allocation24_spill]] %s1605_s6 }
   0x3   :  { %1619 = sst [smem:[#allocation25_spill]] %s1606_s7 }
   0x4   :  { %12 = vsyncpa [#allocation7], 0 }
   0x5   :  { %13 = vsyncpa [#allocation10], 0 }
   0x6   :  { %14 = vsyncpa [#allocation8], 0  ;;  %s1331_s24 = smov 0   ;;  %s1333_s25 = smov 0  }
   0x7   :  { %s1335_s26 = smov 0   ;;  %s1337_s27 = smov 0  }
   0x8   :  { %s1339_s28 = smov 0   ;;  %s1341_s29 = smov 0  }
   0x9   :  { %s1343_s30 = smov 0  }
   0xa LB: > { %1620 = sst [smem:[#allocation16_spill]] %s1255_s24  ;;  %s1608_s8 = sadd.s32 4294967295, %s1279_s30   ;;  %s1279_s30 = sphi %s1343_s30, %s20_s30   ;;  %s1275_s29 = sphi %s1341_s29, %s1656_s29   ;;  %s1271_s28 = sphi %s1339_s28, %s1655_s28   ;;  %s1267_s27 = sphi %s1337_s27, %s1654_s27   ;;  %s1263_s26 = sphi %s1335_s26, %s1653_s26   ;;  %s1259_s25 = sphi %s1333_s25, %s1652_s25   ;;  %s1255_s24 = sphi %s1331_s24, %s1651_s24  }
   0xb   : > { %1621 = sst [smem:[#allocation17_spill]] %s1263_s26  ;;  %s29_s9 = sadd.s32 1, %s1275_s29 }
   0xc   : > { %1622 = sst [smem:[#allocation18_spill]] %s1271_s28  ;;  %p30_p0 = scmp.ge.s32.totalorder %s29_s9, 3 }
   0xd   : > { %s41_s10 = sadd.s32 1, %s1267_s27  ;;  %p48_p1 = scmp.ne.s32.totalorder %s1267_s27, %s1263_s26 }
   0xe   : > { %p49_p2 = scmp.eq.s32.totalorder %s1279_s30, 0  ;;  %s1658_s9 = smov (%p30_p0, %s29_s9), 0 }
   0xf   : > { %1623 = sst [smem:[#allocation19_spill]] %s1658_s9  ;;  %p64_p4 = scmp.lt.s32.totalorder %s1275_s29, 1 }
  0x10   : > { %p1376_p3 = por %p49_p2, %p48_p1  ;;  %s37_s12 = ssub.s32 %s1275_s29, %s1658_s9 }
  0x11   : > { %p66_p5 = scmp.lt.s32.totalorder %s1658_s9, 1  ;;  %p39_p6 = scmp.eq.s32.totalorder %s37_s12, 0 }
  0x12   : > { %s1624_s11 = scalar_select %p1376_p3, 1, 0 }
  0x13   : > { %s73_s13 = sadd.s32 1, %s1259_s25  ;;  %p80_p7 = scmp.ne.s32.totalorder %s1259_s25, %s1255_s24 }
  0x14   : > { %s1386_s14 = scalar_select %p64_p4, %s1275_s29, 1 }
  0x15   : > { %s1389_s15 = scalar_select %p39_p6, %s1267_s27, %s41_s10  }
  0x16   : > { %s67_s16 = scalar_select %p66_p5, %s1658_s9, 1 }
  0x17   : > { %1625 = sst [smem:[#allocation20_spill]] %s1389_s15  ;;  %p909_p8 = scmp.ge.s32.totalorder %s1279_s30, 1 }
  0x18   : > { %s69_s17 = ssub.s32 %s1386_s14, %s67_s16  ;;  %p233_p9 = scmp.lt.s32.totalorder %s1279_s30, 4 }
  0x19   : > { %p71_p10 = scmp.eq.s32.totalorder %s69_s17, 0  ;;  %p1399_p11 = por %p80_p7, %p49_p2 }
  0x1a   : > { %p1403_p12 = pnand %p909_p8, %p233_p9  ;;  %p1414_p0 = scmp.eq.s32.totalorder %s1608_s8, 0 }
  0x1b   : > { %s1626_s18 = scalar_select %p1399_p11, 1, 0 }
  0x1c   : > { %s1627_s19 = scalar_select %p1403_p12, 1, 0 }
  0x1d   : > { %s1408_s20 = scalar_select %p71_p10, %s1259_s25, %s73_s13  }
  0x1e   : > { %p1019_p13 = pneg %p1403_p12  ;;  %s1281_s23 = smov [#allocation9]  }
  0x1f   : > { %1628 = sst [smem:[#allocation21_spill]] %s1408_s20  ;;  %s265_s10 = sshll.u32 %s1281_s23, 4  ;;  %s266_s10 = int_to_ptr.vmem [resolvable:$true] %s265_s10 }
  0x20   : > { %s1629_s21 = scalar_select %p1414_p0, 1, 0 }
  0x21   : > { %p1420_p1 = pnand %p1414_p0, %p1019_p13  ;;  %s1103_s16 = scalar_lea.hbm %s1603_s4, 512 }
  0x22   : > { %1630 = sst [smem:[#allocation22_spill]] %s1629_s21  ;;  %p1104_p2 = scmp.ne.s32.totalorder %s1603_s4, %s1103_s16 }
  0x23   : > { %p1432_p4 = pneg %p1420_p1  ;;  %p1110_p7 = scmp.lt.u32.totalorder %s1103_s16, %s1603_s4 }
  0x25   : > { %p1106_p5 = pnand %p1432_p4, %p1104_p2 }
  0x27   : > { %p1107_p6 = pneg %p1106_p5 }
  0x29   : > { %p1112_p8 = pnand %p1110_p7, %p1107_p6 }
  0x2b   : > { %1115 = shalt.err (!%p1112_p8)
}
  0x2c   : > { %s1116_s12 = scalar_lea.vmem %s266_s10, 512  ;;  %p1124_p0 = scmp.lt.s32.totalorder %s266_s10, %s266_s10 }
  0x2d   : > { %p1117_p9 = scmp.ne.s32.totalorder %s266_s10, %s1116_s12  ;;  %p1125_p12 = scmp.lt.s32.totalorder %s1116_s12, %s1116_s12 }
  0x2f   : > { %p1119_p10 = pnand %p1117_p9, %p1432_p4  ;;  %p1126_p11 = por %p1125_p12, %p1124_p0 }
  0x31   : > { %p1120_p13 = pneg %p1119_p10 }
  0x33   : > { %p1127_p3 = pnand %p1126_p11, %p1120_p13 }
  0x35   : > { %1130 = shalt.err (!%p1127_p3)
}
  0x36   : > { %s1282_s9 = smov 128   ;;  %s1283_s13 = smov 8  }
  0x37   : > { %1025 = dma.hbm_to_vmem [thread:$0]  (!%p1420_p1), %s1603_s4, 512, %s266_s10, [#allocation10], %s1282_s9, %s1282_s9, %s1283_s13  }
  0x38   : > { %s1284_s17 = smov [#allocation6]   ;;  %s1285_s20 = smov [#allocation11]  }
  0x39   : > { %s252_s23 = sshll.u32 %s1284_s17, 4  ;;  %s278_s12 = sshll.u32 %s1285_s20, 4  ;;  %s253_s23 = int_to_ptr.vmem [resolvable:$true] %s252_s23  ;;  %s279_s12 = int_to_ptr.vmem [resolvable:$true] %s278_s12 }
  0x3a   : > { %s1131_s2 = scalar_lea.hbm %s1602_s3, 512 }
  0x3b   : > { %p1132_p3 = scmp.ne.s32.totalorder %s1602_s3, %s1131_s2  ;;  %p1138_p0 = scmp.lt.u32.totalorder %s1131_s2, %s1602_s3 }
  0x3d   : > { %p1134_p11 = pnand %p1132_p3, %p1432_p4 }
  0x3f   : > { %p1135_p12 = pneg %p1134_p11 }
  0x41   : > { %p1140_p2 = pnand %p1138_p0, %p1135_p12 }
  0x43   : > { %1143 = shalt.err (!%p1140_p2)
}
  0x44   : > { %s1144_s10 = scalar_lea.vmem %s253_s23, 512  ;;  %p1152_p8 = scmp.lt.s32.totalorder %s253_s23, %s253_s23 }
  0x45   : > { %p1145_p5 = scmp.ne.s32.totalorder %s253_s23, %s1144_s10  ;;  %p1153_p9 = scmp.lt.s32.totalorder %s1144_s10, %s1144_s10 }
  0x47   : > { %p1147_p6 = pnand %p1145_p5, %p1432_p4  ;;  %p1154_p10 = por %p1153_p9, %p1152_p8 }
  0x49   : > { %p1148_p7 = pneg %p1147_p6 }
  0x4b   : > { %p1155_p13 = pnand %p1154_p10, %p1148_p7 }
  0x4d   : > { %1158 = shalt.err (!%p1155_p13)
}
  0x4e   : > { %1022 = dma.hbm_to_vmem [thread:$0]  (!%p1420_p1), %s1602_s3, 512, %s253_s23, [#allocation7], %s1282_s9, %s1282_s9, %s1283_s13  }
  0x4f   : > { %s1159_s26 = scalar_lea.hbm %s1604_s5, 512 }
  0x50   : > { %p1160_p3 = scmp.ne.s32.totalorder %s1604_s5, %s1159_s26  ;;  %p1166_p0 = scmp.lt.u32.totalorder %s1159_s26, %s1604_s5 }
  0x52   : > { %p1162_p11 = pnand %p1160_p3, %p1432_p4 }
  0x54   : > { %p1163_p12 = pneg %p1162_p11 }
  0x56   : > { %p1168_p2 = pnand %p1166_p0, %p1163_p12 }
  0x58   : > { %1171 = shalt.err (!%p1168_p2)
}
  0x59   : > { %s1172_s16 = scalar_lea.vmem %s279_s12, 512  ;;  %p1180_p8 = scmp.lt.s32.totalorder %s279_s12, %s279_s12 }
  0x5a   : > { %p1173_p5 = scmp.ne.s32.totalorder %s279_s12, %s1172_s16  ;;  %p1181_p9 = scmp.lt.s32.totalorder %s1172_s16, %s1172_s16 }
  0x5c   : > { %p1175_p6 = pnand %p1173_p5, %p1432_p4  ;;  %p1182_p10 = por %p1181_p9, %p1180_p8 }
  0x5e   : > { %p1176_p7 = pneg %p1175_p6 }
  0x60   : > { %p1183_p13 = pnand %p1182_p10, %p1176_p7 }
  0x62   : > { %1186 = shalt.err (!%p1183_p13)
}
  0x63   : > { %1028 = dma.hbm_to_vmem [thread:$0]  (!%p1420_p1), %s1604_s5, 512, %s279_s12, [#allocation10], %s1282_s9, %s1282_s9, %s1283_s13  }
  0x64   : > { %p914_p3 = scmp.ge.s32.totalorder %s1279_s30, 3 }
  0x65   : > { %p1633_p4 = scmp.ne.s32.totalorder (!%p914_p3), %s1624_s11, 0 }
  0x66   : > { %291 = sbr.rel (%p914_p3) target bundleno = 125 (0x7d), region = 36 }
  0x6d   : > { %294 = sbr.rel (!%p1633_p4) target bundleno = 116 (0x74), region = 40  ;;  %s296_s8 = sand.u32 (%p1633_p4), 1, %s1267_s27  }
  0x6e   : > { %s916_s10 = sshll.u32 (%p1633_p4), %s1275_s29, 3  ;;  %s915_s6 = sshll.u32 (%p1633_p4), %s296_s8, 4 }
  0x6f   : > { %s303_s7 = scalar_lea.vmem (%p1633_p4), %s1599_s0, %s916_s10  ;;  %s298_s24 = scalar_lea.vmem (%p1633_p4), [#allocation4], %s915_s6 }
  0x70   : > { %v333_v0 = vld [vmem:[%s303_s7] sm:$0xff] (%p1633_p4)  ;;  %v335_v1 = vld [vmem:[%s303_s7 + $0x18] sm:$0xff] (%p1633_p4) }
  0x71   : > { %334 = vst [vmem:[%s298_s24] sm:$0xff] (%p1633_p4), %v333_v0  ;;  %336 = vst [vmem:[%s298_s24 + $0x8] sm:$0xff] (%p1633_p4), %v335_v1 }
  0x74 PF: > { %p1634_p1 = scmp.ne.s32.totalorder %s1626_s18, 0 }
  0x75   : > { %s344_s11 = sand.u32 (%p1634_p1), 1, %s1259_s25   ;;  %s918_s9 = sshll.u32 (%p1634_p1), %s1386_s14, 3 }
  0x76   : > { %342 = sbr.rel (!%p1634_p1) target bundleno = 125 (0x7d), region = 78  ;;  %s917_s13 = sshll.u32 (%p1634_p1), %s344_s11, 4 }
  0x77   : > { %s353_s28 = scalar_lea.vmem (%p1634_p1), %s1600_s1, %s918_s9  ;;  %s346_s20 = scalar_lea.vmem (%p1634_p1), [#allocation5], %s917_s13 }
  0x78   : > { %v383_v2 = vld [vmem:[%s353_s28] sm:$0xff] (%p1634_p1)  ;;  %v385_v3 = vld [vmem:[%s353_s28 + $0x10] sm:$0xff] (%p1634_p1) }
  0x79   : > { %384 = vst [vmem:[%s346_s20] sm:$0xff] (%p1634_p1), %v383_v2  ;;  %386 = vst [vmem:[%s346_s20 + $0x8] sm:$0xff] (%p1634_p1), %v385_v3 }
  0x7d PF: > { %p1635_p11 = scmp.ne.s32.totalorder %s1627_s19, 0 }
  0x7e   : > { %s1636_s18 = sld [smem:[#allocation17_spill]] (!%p1635_p11)  ;;  %s1637_s21 = sld [smem:[#allocation16_spill]] (!%p1635_p11) }
  0x7f   : > { %395 = sbr.rel (%p1635_p11) target bundleno = 459 (0x1cb), region = 116  ;;  %s1638_s15 = sld [smem:[#allocation22_spill]] (!%p1635_p11) }
  0x84   : > { %s398_s16 = sand.u32 (!%p1635_p11), 1, %s1636_s18   ;;  %s405_s14 = sand.u32 (!%p1635_p11), 1, %s1637_s21  }
  0x85   : > { %s920_s17 = sshll.u32 (!%p1635_p11), %s398_s16, 4  ;;  %s1512_s23 = sshll.u32 (!%p1635_p11), %s405_s14, 4 }
  0x86   : > { %s400_s8 = scalar_lea.vmem [#allocation4], %s920_s17  ;;  %s407_s10 = scalar_lea.vmem [#allocation5], %s1512_s23 }
  0x87   : > { %p1639_p12 = scmp.ne.s32.totalorder %s1638_s15, 0 }
  0x89   : > { %1242 = dma.done.wait (%p1639_p12), [#allocation7], 512  }
  0x8a   : > { %1244 = vsyncadd (%p1639_p12), [#allocation7], 4294966784 }
  0x8b   : > { %1246 = dma.done.wait (%p1639_p12), [#allocation10], 1024  }
  0x8c   : > { %1248 = vsyncadd (%p1639_p12), [#allocation10], 4294966272  ;;  %s1640_s19 = sld [smem:[#allocation18_spill]] }
  0x92   : > { %p925_p0 = scmp.ne.s32.totalorder %s1640_s19, 0 }
  0x93   : > { %vm463_vm0 = vcmask (!%p925_p0), 254976   ;;  %v1286_v4 = vmov (!%p925_p0), 0.0  }
  0x94   : > { %462 = sbr.rel (%p925_p0) target bundleno = 155 (0x9b), region = 140  ;;  %464 = vst.msk [vmem:[#allocation2] sm:$0x3] (!%p925_p0), %vm463_vm0, %v1286_v4  ;;  %465 = vst.msk [vmem:[#allocation3] sm:$0x3] (!%p925_p0), %vm463_vm0, %v1286_v4 }
  0x9b PF: > { %v466_v5 = vld [vmem:[%s400_s8] sm:$0xff]  ;;  %s1641_s6 = sld [smem:[#allocation18_spill]]  ;;  %v467_v6 = vld [vmem:[%s400_s8 + $0x8] sm:$0xff]  ;;  %vm469_vm1 = vcmask 261120   ;;  %vm486_vm2 = vcmask 1041409   ;;  %vm490_vm3 = vcmask 254976  }
  0x9c   : > { %v470_v7 = vsel %vm469_vm1, %v466_v5, 0.0  ;;  %v477_v8 = vsel %vm469_vm1, %v467_v6, 0.0  ;;  %v468_v19 = vld [vmem:[#allocation2] sm:$0x3] }
  0x9d   : > { %v471_v9 = vrot.slane %v470_v7, 4  ;;  %v478_v10 = vrot.slane %v477_v8, 4 }
  0x9f   : > { %v472_v11 = vadd.f32 %v471_v9, %v470_v7  ;;  %v479_v12 = vadd.f32 %v478_v10, %v477_v8 }
  0xa1   : > { %s926_s2 = sshll.u32 %s1641_s6, 3  ;;  %v473_v13 = vrot.slane %v472_v11, 2  ;;  %v480_v14 = vrot.slane %v479_v12, 2 }
  0xa2   : > { %p927_p2 = scmp.ge.s32.totalorder %s926_s2, 10 }
  0xa3   : > { %v474_v15 = vadd.f32 %v473_v13, %v472_v11  ;;  %v481_v16 = vadd.f32 %v480_v14, %v479_v12  ;;  %s499_s22 = ssub.s32 (!%p927_p2), 10, %s926_s2  ;;  %v500_v24 = vlaneseq (!%p927_p2)  ;;  %v497_v26 = vld [vmem:[%s407_s10] sm:$0xff] (!%p927_p2)  ;;  %v498_v27 = vld [vmem:[%s407_s10 + $0x8] sm:$0xff] (!%p927_p2) }
  0xa4   : > { %v502_v25 = vstv (!%p927_p2), %s499_s22  ;;  %v506_v43 = vld [vmem:[#allocation3] sm:$0x3] (!%p927_p2) }
  0xa5   : > { %v475_v17 = vrot.slane %v474_v15, 1  ;;  %v482_v18 = vrot.slane %v481_v16, 1  ;;  %v501_v28 = vshrl.u32 (!%p927_p2), %v500_v24, 7 }
  0xa6   : > { %496 = sbr.rel (%p927_p2) target bundleno = 186 (0xba), region = 144 }
  0xa7   : > { %v476_v20 = vadd.f32 %v475_v17, %v474_v15  ;;  %v483_v21 = vadd.f32 %v482_v18, %v481_v16  ;;  %vm503_vm4 = vcmp.lt.s32.totalorder (!%p927_p2), %v501_v28, %v502_v25 }
  0xa8   : > { %v504_v29 = vsel (!%p927_p2), %vm503_vm4, %v497_v26, 0.0  ;;  %v505_v30 = vsel (!%p927_p2), %vm503_vm4, %v498_v27, 0.0 }
  0xa9   : > { %v487_v22 = vsel %vm486_vm2, %v483_v21, %v476_v20  ;;  %v507_v31 = vsel (!%p927_p2), %vm469_vm1, %v504_v29, 0.0  ;;  %v514_v32 = vsel (!%p927_p2), %vm469_vm1, %v505_v30, 0.0 }
  0xaa   : > { %v489_v23 = vadd.f32 %v487_v22, %v468_v19  ;;  %v508_v33 = vrot.slane (!%p927_p2), %v507_v31, 4  ;;  %v515_v34 = vrot.slane (!%p927_p2), %v514_v32, 4 }
  0xac   : > { %491 = vst.msk [vmem:[#allocation2] sm:$0x3] %vm490_vm3, %v489_v23  ;;  %v509_v35 = vadd.f32 (!%p927_p2), %v508_v33, %v507_v31  ;;  %v516_v36 = vadd.f32 (!%p927_p2), %v515_v34, %v514_v32 }
  0xae   : > { %v510_v37 = vrot.slane %v509_v35, 2  ;;  %v517_v38 = vrot.slane %v516_v36, 2 }
  0xb0   : > { %v511_v39 = vadd.f32 %v510_v37, %v509_v35  ;;  %v518_v40 = vadd.f32 %v517_v38, %v516_v36 }
  0xb2   : > { %v512_v41 = vrot.slane %v511_v39, 1  ;;  %v519_v42 = vrot.slane %v518_v40, 1 }
  0xb4   : > { %v513_v44 = vadd.f32 %v512_v41, %v511_v39  ;;  %v520_v45 = vadd.f32 %v519_v42, %v518_v40 }
  0xb6   : > { %v523_v46 = vsel %vm486_vm2, %v520_v45, %v513_v44 }
  0xb7   : > { %v525_v47 = vadd.f32 %v523_v46, %v506_v43 }
  0xb9   : > { %526 = vst.msk [vmem:[#allocation3] sm:$0x3] %vm490_vm3, %v525_v47 }
  0xba PF: > { %s1642_s7 = sld [smem:[#allocation18_spill]] }
  0xc0   : > { %p928_p5 = scmp.ne.s32.totalorder %s1642_s7, 2 }
  0xc1   : > { %v537_v48 = vld [vmem:[#allocation9] sm:$0xff] (!%p928_p5)  ;;  %v538_v49 = vld [vmem:[#allocation9 + $0x8] sm:$0xff] (!%p928_p5)  ;;  %v1287_v51 = vmov (!%p928_p5), 0.0|0.0   ;;  %v539_v54 = vld [vmem:[#allocation9 + $0x10] sm:$0xff] (!%p928_p5)  ;;  %vm1288_vm5 = vmmov (!%p928_p5), 0   ;;  %v1289_v59 = vmov (!%p928_p5), 0.0  }
  0xc2   : > { %530 = sbr.rel (%p928_p5) target bundleno = 428 (0x1ac), region = 148  ;;  %v532_v50 = vld [vmem:[#allocation6] sm:$0xff] (!%p928_p5)  ;;  %985 = vmatprep.subr.bf16.mxu0 (!%p928_p5), %v1287_v51  ;;  %v986_v52 = vpack.c.bf16 (!%p928_p5), %v538_v49, %v537_v48  ;;  %991 = vmatprep.subr.bf16.mxu1 (!%p928_p5), %v1287_v51  ;;  %v533_v53 = vld [vmem:[#allocation6 + $0x8] sm:$0xff] (!%p928_p5)  ;;  %v540_v55 = vld [vmem:[#allocation9 + $0x18] sm:$0xff] (!%p928_p5)  ;;  %s1643_s9 = sld [smem:[#allocation23_spill]] (!%p928_p5) }
  0xc3   : > { %v992_v56 = vpack.c.bf16 (!%p928_p5), %v533_v53, %v532_v50  ;;  %v534_v57 = vld [vmem:[#allocation6 + $0x10] sm:$0xff] (!%p928_p5)  ;;  %v535_v58 = vld [vmem:[#allocation6 + $0x18] sm:$0xff] (!%p928_p5)  ;;  %960 = vmatprep.mubr.msk.f32.mxu0 (!%p928_p5), %vm1288_vm5, %v1289_v59  ;;  %971 = vmatprep.mubr.msk.f32.mxu1 (!%p928_p5), %vm1288_vm5, %v1289_v59  ;;  %v989_v60 = vpack.c.bf16 (!%p928_p5), %v540_v55, %v539_v54  ;;  %v688_v62 = vld [vmem:[#allocation11] sm:$0xff] (!%p928_p5)  ;;  %s1644_s26 = sld [smem:[#allocation24_spill]] (!%p928_p5) }
  0xc4   : > { %987 = vmatpush3.bf16.msra.mxu0 (!%p928_p5), %v986_v52  ;;  %v995_v61 = vpack.c.bf16 (!%p928_p5), %v535_v58, %v534_v57  ;;  %v689_v63 = vld [vmem:[#allocation11 + $0x8] sm:$0xff] (!%p928_p5)  ;;  %v536_v0 = vld [vmem:[#allocation3] sm:$0x3] (!%p928_p5)  ;;  %v531_v2 = vld [vmem:[#allocation2] sm:$0x3] (!%p928_p5) }
  0xc5   : > { %993 = vmatpush3.bf16.msra.mxu1 (!%p928_p5), %v992_v56  ;;  %988 = vmatprep.subr.bf16.mxu0 (!%p928_p5), %v1287_v51  ;;  %v998_v1 = vpack.c.bf16 (!%p928_p5), %v689_v63, %v688_v62  ;;  %v690_v3 = vld [vmem:[#allocation11 + $0x10] sm:$0xff] (!%p928_p5)  ;;  %v691_v4 = vld [vmem:[#allocation11 + $0x18] sm:$0xff] (!%p928_p5) }
  0xc6   : > { %994 = vmatprep.subr.bf16.mxu1 (!%p928_p5), %v1287_v51  ;;  %v1001_v5 = vpack.c.bf16 (!%p928_p5), %v691_v4, %v690_v3 }
  0xc8   : > { %990 = vmatpush3.bf16.msra.mxu0 (!%p928_p5), %v989_v60  ;;  %v687_v6 = vld [vmem:[%s1643_s9] sm:$0x3] (!%p928_p5) }
  0xc9   : > { %996 = vmatpush3.bf16.msra.mxu1 %v995_v61  ;;  %997 = vmatprep.subr.bf16.mxu0 %v1287_v51  ;;  %v932_v13 = vld [vmem:[%s1644_s26] ss:$0 sm:$0xff] }
  0xcb   : > { %961 = vmatmul.mubr.msk.f32.vlgmr.msra.gmra.mrb[0].mxu0 %vm469_vm1, %v536_v0 }
  0xcc   : > { %972 = vmatmul.mubr.msk.f32.vlgmr.msra.gmra.mrb[0].mxu1 %vm469_vm1, %v531_v2  ;;  %999 = vmatpush3.bf16.msra.mxu0 %v998_v1 }
  0xcd   : > { %1000 = vmatprep.subr.bf16.mxu0 %v1287_v51  ;;  %982 = vmatprep.mubr.msk.f32.mxu0 %vm1288_vm5, %v1289_v59 }
  0xd0   : > { %1002 = vmatpush3.bf16.msra.mxu0 %v1001_v5 }
  0xd3   : > { %983 = vmatmul.mubr.msk.f32.vlgmr.msra.gmra.mrb[2].mxu0 %vm469_vm1, %v687_v6 }
 0x19e   : > { %v610_v7 = vpop.f32.mrb[0].mxu0 }
 0x19f   : > { %v962_v8 = vpop.f32.mrb[1].mxu0  ;;  %v683_v9 = vpop.f32.mrb[0].mxu1 }
 0x1a0   : > { %v684_v10 = vadd.f32 %v683_v9, %v610_v7  ;;  %v973_v11 = vpop.f32.mrb[1].mxu1 }
 0x1a6   : > { %v761_v12 = vpop.f32.mrb[2].mxu0 }
 0x1a7   : > { %v765_v14 = vadd.f32 %v761_v12, %v684_v10  ;;  %v984_v15 = vpop.f32.mrb[3].mxu0 }
 0x1a9   : > { %v773_v16 = vadd.f32 %v932_v13, %v765_v14 }
 0x1ab   : > { %774 = vst [vmem:[#allocation12] sm:$0x3] %v773_v16 }
 0x1ac PF: > { %s1645_s28 = sadd.s32 4294967295, %s1279_s30   ;;  %s1290_s18 = smov [#allocation12]  }
 0x1ad   : > { %p1552_p6 = scmp.eq.s32.totalorder %s1645_s28, 2  ;;  %s784_s21 = sshll.u32 %s1290_s18, 4  ;;  %s785_s21 = int_to_ptr.vmem [resolvable:$true] %s784_s21 }
 0x1ae   : > { %s1187_s15 = scalar_lea.vmem %s785_s21, 32  ;;  %p1194_p10 = scmp.lt.s32.totalorder %s785_s21, %s785_s21 }
 0x1af   : > { %p1188_p7 = scmp.ne.s32.totalorder %s785_s21, %s1187_s15  ;;  %p1195_p13 = scmp.lt.s32.totalorder %s1187_s15, %s1187_s15 }
 0x1b1   : > { %p1189_p8 = pnand %p1188_p7, %p1552_p6  ;;  %p1196_p3 = por %p1195_p13, %p1194_p10 }
 0x1b3   : > { %p1190_p9 = pneg %p1189_p8 }
 0x1b5   : > { %p1197_p4 = pnand %p1196_p3, %p1190_p9 }
 0x1b7   : > { %1200 = shalt.err (!%p1197_p4)
}
 0x1b8   : > { %s1647_s17 = sld [smem:[#allocation25_spill]] }
 0x1be   : > { %s1201_s23 = scalar_lea.hbm %s1647_s17, 32 }
 0x1bf   : > { %p1202_p1 = scmp.ne.s32.totalorder %s1647_s17, %s1201_s23  ;;  %p1207_p0 = scmp.lt.u32.totalorder %s1201_s23, %s1647_s17 }
 0x1c1   : > { %p1203_p11 = pnand %p1202_p1, %p1552_p6 }
 0x1c3   : > { %p1204_p12 = pneg %p1203_p11 }
 0x1c5   : > { %p1209_p2 = pnand %p1207_p0, %p1204_p12 }
 0x1c7   : > { %1212 = shalt.err (!%p1209_p2)
}
 0x1c8   : > { %1016 = dma.vmem_to_hbm [thread:$0]  (%p1552_p6), %s785_s21, 32, %s1647_s17, [#allocation8]  }
 0x1c9   : > { %1250 = dma.done.wait (%p1552_p6), [#allocation8], 32  }
 0x1ca   : > { %1252 = vsyncadd (%p1552_p6), [#allocation8], 4294967264 }
 0x1cb PF: > { %s20_s30 = sadd.s32 1, %s1279_s30   ;;  %s1648_s7 = sld [smem:[#allocation21_spill]] }
 0x1cc   : > { %p17_p5 = scmp.ge.s32.totalorder %s20_s30, 5   ;;  %s1649_s11 = sld [smem:[#allocation20_spill]] }
 0x1cd   : > { %s1650_s9 = sld [smem:[#allocation19_spill]]  ;;  %s1651_s24 = smov %s1259_s25 }
 0x1ce   : > { %s1653_s26 = smov %s1267_s27  ;;  %s1655_s28 = smov %s1275_s29 }
 0x1cf   :  { %19 = sbr.rel (!%p17_p5) target bundleno = 10 (0xa), region = 193 }
 0x1d1   : > { %s1652_s25 = smov %s1648_s7 }
 0x1d2   : > { %s1654_s27 = smov %s1649_s11 }
 0x1d3   : > { %s1656_s29 = smov %s1650_s9 }
 0x1d6   :  { %797 = vsyncpa [#allocation7], 1 }
 0x1d7   :  { %799 = vsyncpa [#allocation7 + $0x1], 1 }
 0x1d8   :  { %800 = vsyncpa [#allocation10], 1 }
 0x1d9   :  { %801 = vsyncpa [#allocation8], 1 }
 0x1da   :  { %803 = vsyncpa [#allocation8 + $0x1], 1 }

</bundles_post_ra>
